<compile_context>
chip_gen: v7x
topology: tpu7x:2x2x1
jax: 0.10.0
libtpu: 0.0.40
codegen_flags: <defaults>
</compile_context>

<pallas_src>
import jax
import jax.numpy as jnp
from jax import lax
from jax.experimental import pallas as pl
from jax.experimental.pallas import tpu as pltpu


def _l2_normalize_kernel(x_ref, o_ref):
    # x_ref / o_ref: (tm, D) tile in VMEM
    x = x_ref[...].astype(jnp.float32)
    sq_sum = jnp.sum(x * x, axis=-1, keepdims=True)   # (tm, 1) row-wise ||x||^2
    inv_norm = lax.rsqrt(sq_sum)                       # EUP rsqrt; zero rows -> inf/nan, matches torch 0/0
    o_ref[...] = (x * inv_norm).astype(o_ref.dtype)


def _round_up(x, m):
    return ((x + m - 1) // m) * m


def _sublane_multiple(dtype):
    # sub-32-bit dtypes pack along the sublane axis
    return {4: 8, 2: 16, 1: 32}.get(jnp.dtype(dtype).itemsize, 8)


def normalization_post_projection(proj, *, tm=None,
                                  target_tile_bytes=2 * 1024 * 1024,
                                  input_buffer_count=2):
    """Row-wise L2 normalization: proj / ||proj||_2 along dim=1 (PyTorch semantics)."""
    N, D = proj.shape
    itemsize = jnp.dtype(proj.dtype).itemsize
    sub = _sublane_multiple(proj.dtype)

    if tm is None:
        # aim for ~target_tile_bytes per input tile, capped at 1024 rows
        tm = max(sub, min(1024, target_tile_bytes // max(1, D * itemsize)))
    # round down to the packed sublane granularity
    tm = max(sub, (tm // sub) * sub)
    # don't exceed the (padded) batch; keep >= 2 grid steps when the batch is
    # big enough so the "parallel" axis can shard across v7x's 2 TensorCores
    if N > 2 * sub:
        tm = min(tm, _round_up(pl.cdiv(N, 2), sub))
    else:
        tm = min(tm, _round_up(N, sub))

    grid = (pl.cdiv(N, tm),)

    # VMEM budget: input + output tiles, multi-buffered, plus headroom.
    tile_bytes = tm * D * itemsize
    n_bufs = max(2, input_buffer_count) + 2
    vmem_limit = int(min(max(n_bufs * tile_bytes + (4 << 20), 16 << 20), 48 << 20))

    idx_map = lambda i: (i, 0)
    if input_buffer_count > 2:
        in_spec = pl.BlockSpec((tm, D), idx_map,
                               pipeline_mode=pl.Buffered(input_buffer_count))
    else:
        in_spec = pl.BlockSpec((tm, D), idx_map)

    # TODO(synk): if D < 128, a wrapper-side reshape to a lane-dense (>=128)
    # store axis would avoid masked vst.msk; kept 1:1 with the torch layout here.
    return pl.pallas_call(
        _l2_normalize_kernel,
        out_shape=jax.ShapeDtypeStruct((N, D), proj.dtype),
        grid_spec=pltpu.PrefetchScalarGridSpec(
            num_scalar_prefetch=0,
            grid=grid,
            in_specs=[in_spec],
            out_specs=pl.BlockSpec((tm, D), idx_map),
        ),
        compiler_params=pltpu.CompilerParams(
            dimension_semantics=("parallel",),
            vmem_limit_bytes=vmem_limit,
        ),
    )(proj)


class BaseModelPallas:
    """JAX/Pallas counterpart of MRF/BaseModel.py::BaseModel."""

    def __init__(self, joint, start_by_projection, nb_params=None,
                 projection=None, ghost=False):
        self.start_by_projection = start_by_projection
        self.projection = projection
        self.nb_params = nb_params
        self.joint = joint
        self.ghost = ghost

    def assert_projection_defined(self):
        assert (self.start_by_projection and
                getattr(self.projection, "start_by_projection", False)), \
            "Using a projection requires defining projection attributes."

    def assert_joint_learning(self):
        assert (self.joint and self.nb_params is not None), \
            "Joint learning requires nb_params."

    def normalization_post_projection(self, proj):
        return normalization_post_projection(proj)

    def normalization_post_projection_complex(self, proj):
        # same computation: normalize by row norm, broadcast over proj.shape[1]
        return normalization_post_projection(proj)

    def forward(self, signals):
        # TODO(synk): forward() is abstract in BaseModel (NotImplementedError);
        # no concrete architecture exists to translate.
        raise NotImplementedError(
            "forward must be implemented by a subclass of BaseModel.")


if __name__ == "__main__":
    key = jax.random.PRNGKey(0)
    k1, k2, k3 = jax.random.split(key, 3)

    class _Proj:
        start_by_projection = True
        dimension_projection = 128

    model = BaseModelPallas(joint=False, start_by_projection=True,
                            projection=_Proj())

    # 1) small f32 batch (single full tile)
    x1 = jax.random.normal(k1, (16, 128), dtype=jnp.float32)
    out1 = jax.block_until_ready(model.normalization_post_projection(x1))
    ref1 = x1 / jnp.linalg.norm(x1, axis=1, keepdims=True)
    assert jnp.allclose(out1, ref1, atol=1e-5, rtol=1e-5)

    # 2) non-divisible batch -> cdiv grid with a partial last block (grid = 2)
    x2 = jax.random.normal(k2, (50, 128), dtype=jnp.float32)
    out2 = jax.block_until_ready(model.normalization_post_projection_complex(x2))
    ref2 = x2 / jnp.linalg.norm(x2, axis=1, keepdims=True)
    assert jnp.allclose(out2, ref2, atol=1e-5, rtol=1e-5)

    # 3) bf16 input -> packed sublane tile (row tile multiple of 16)
    x3 = jax.random.normal(k3, (32, 128), dtype=jnp.bfloat16)
    out3 = jax.block_until_ready(model.normalization_post_projection(x3))
    x3f = x3.astype(jnp.float32)
    ref3 = (x3f / jnp.linalg.norm(x3f, axis=1, keepdims=True)).astype(jnp.bfloat16)
    assert jnp.allclose(out3.astype(jnp.float32), ref3.astype(jnp.float32),
                        atol=2e-2, rtol=2e-2)

    print("KERNEL_OK")
</pallas_src>

<mosaic_0001>
module attributes {stable_mosaic.version = 11 : i64} {
  func.func @_l2_normalize_kernel(%arg0: i32, %arg1: memref<16x128xf32, #tpu.memory_space<vmem>>, %arg2: memref<16x128xf32, #tpu.memory_space<vmem>>) attributes {dimension_semantics = [#tpu.dimension_semantics<parallel>], iteration_bounds = array<i64: 1>, scalar_prefetch = 0 : i64, scratch_operands = 0 : i64, tpu.core_type = #tpu.core_type<tc>, window_params = [{transform_indices = @transform_0, window_bounds = array<i64: 16, 128>}, {transform_indices = @transform_1, window_bounds = array<i64: 16, 128>}]} {
    %c0 = arith.constant 0 : index
    %c0_0 = arith.constant 0 : index
    %0 = vector.load %arg1[%c0, %c0_0] : memref<16x128xf32, #tpu.memory_space<vmem>>, vector<16x128xf32>
    %1 = arith.mulf %0, %0 : vector<16x128xf32>
    %cst = arith.constant dense<0.000000e+00> : vector<16xf32>
    %2 = vector.multi_reduction <add>, %1, %cst [1] : vector<16x128xf32> to vector<16xf32>
    %3 = vector.shape_cast %2 : vector<16xf32> to vector<16x1xf32>
    %4 = math.rsqrt %3 : vector<16x1xf32>
    %5 = vector.broadcast %4 : vector<16x1xf32> to vector<16x128xf32>
    %6 = arith.mulf %0, %5 : vector<16x128xf32>
    %c0_1 = arith.constant 0 : index
    %c0_2 = arith.constant 0 : index
    %7 = vector.load %arg2[%c0_1, %c0_2] : memref<16x128xf32, #tpu.memory_space<vmem>>, vector<16x128xf32>
    tpu.vector_store %arg2[%c0_1, %c0_2], %6 {strides = array<i32>} : memref<16x128xf32, #tpu.memory_space<vmem>>, vector<16x128xf32>,
    return
  }
  func.func @transform_0(%arg0: i32) -> (i32, i32) {
    %c0_i32 = arith.constant 0 : i32
    %c0_i32_0 = arith.constant 0 : i32
    return %arg0, %c0_i32 : i32, i32
  }
  func.func @transform_1(%arg0: i32) -> (i32, i32) {
    %c0_i32 = arith.constant 0 : i32
    %c0_i32_0 = arith.constant 0 : i32
    return %arg0, %c0_i32 : i32, i32
  }
}

</mosaic_0001>

<bundles_post_ra>
// kernel: tpu_custom_call.1
= control target key start
LH: loop header
LB: loop body
LE: loop exit
PB: predicated region body
PF: predicated region fallthrough
CT: control target
= control target key end

     0   :  { %6 = vsyncpa [#allocation3], 0  ;;  %s154_s0 = inlined_call_operand.hbm [shape: f32[16,128], index: 0, kind: input, shape index: {}]   ;;  %s155_s1 = inlined_call_operand.hbm [shape: f32[16,128], index: 1, kind: output, shape index: {}]  }
   0x1   :  { %7 = vsyncpa [#allocation4], 0  ;;  %s110_s6 = smov [#allocation2]   ;;  %s62_s10 = scalar_lea.hbm %s154_s0, 256 }
   0x2   :  { %s13_s7 = sshll.u32 %s110_s6, 4  ;;  %p63_p0 = scmp.ne.s32.totalorder %s154_s0, %s62_s10  ;;  %s14_s7 = int_to_ptr.vmem [resolvable:$true] %s13_s7 }
   0x3   :  { %p66_p1 = scmp.lt.u32.totalorder %s62_s10, %s154_s0 }
   0x5   :  { %p68_p2 = pnand %p66_p1, %p63_p0 }
   0x7   :  { %71 = shalt.err (!%p68_p2)
}
   0x8   :  { %s72_s15 = scalar_lea.vmem %s14_s7, 256  ;;  %p77_p4 = scmp.lt.s32.totalorder %s14_s7, %s14_s7 }
   0x9   :  { %p73_p3 = scmp.ne.s32.totalorder %s14_s7, %s72_s15  ;;  %p78_p5 = scmp.lt.s32.totalorder %s72_s15, %s72_s15 }
   0xb   :  { %p79_p6 = por %p78_p5, %p77_p4 }
   0xd   :  { %p80_p7 = pnand %p79_p6, %p73_p3 }
   0xf   :  { %83 = shalt.err (!%p80_p7)
}
  0x10   :  { %s111_s16 = smov 128   ;;  %s112_s17 = smov 8  }
  0x11   :  { %19 = dma.hbm_to_vmem [thread:$0]  %s154_s0, 256, %s14_s7, [#allocation3], %s111_s16, %s111_s16, %s112_s17  }
  0x12   :  { %106 = dma.done.wait [#allocation3], 256  }
  0x13   :  { %107 = vsyncadd [#allocation3], 4294967040  ;;  %v23_v0 = vld [vmem:[#allocation2] sm:$0xff]  ;;  %v24_v1 = vld [vmem:[#allocation2 + $0x8] sm:$0xff]  ;;  %s113_s20 = smov [#allocation5]  }
  0x14   :  { %v25_v2 = vmul.f32 %v23_v0, %v23_v0  ;;  %v26_v3 = vmul.f32 %v24_v1, %v24_v1  ;;  %s42_s21 = sshll.u32 %s113_s20, 4  ;;  %s43_s21 = int_to_ptr.vmem [resolvable:$true] %s42_s21 }
  0x15   :  { %s84_s0 = scalar_lea.vmem %s43_s21, 256  ;;  %p89_p9 = scmp.lt.s32.totalorder %s43_s21, %s43_s21 }
  0x16   :  { %27 = vadd.xlane.f32.xlu0 %v25_v2  ;;  %p85_p8 = scmp.ne.s32.totalorder %s43_s21, %s84_s0  ;;  %p90_p10 = scmp.lt.s32.totalorder %s84_s0, %s84_s0 }
  0x18   :  { %p91_p11 = por %p90_p10, %p89_p9 }
  0x1a   :  { %29 = vadd.xlane.f32.xlu0 %v26_v3  ;;  %p92_p12 = pnand %p91_p11, %p85_p8 }
  0xa3   :  { %v28_v4 = vpop.xlane.xlu0 %27 }
  0xa4   :  { %58 = vrsqrt.f32 %v28_v4 }
  0xa7   :  { %v30_v5 = vpop.xlane.xlu0 %29 }
  0xa8   :  { %60 = vrsqrt.f32 %v30_v5 }
  0xae   :  { %v59_v6 = vpop.eup %58 }
  0xaf   :  { %v33_v7 = vmul.f32 %v59_v6, %v23_v0 }
  0xb1   :  { %35 = vst [vmem:[#allocation5] sm:$0xff] %v33_v7 }
  0xb2   :  { %v61_v8 = vpop.eup %60 }
  0xb3   :  { %v34_v9 = vmul.f32 %v61_v8, %v24_v1 }
  0xb5   :  { %36 = vst [vmem:[#allocation5 + $0x8] sm:$0xff] %v34_v9 }
  0xb6   :  { %95 = shalt.err (!%p92_p12)
}
  0xb7   :  { %s96_s24 = scalar_lea.hbm %s155_s1, 256 }
  0xb8   :  { %p97_p13 = scmp.ne.s32.totalorder %s155_s1, %s96_s24  ;;  %p100_p0 = scmp.lt.u32.totalorder %s96_s24, %s155_s1 }
  0xba   :  { %p102_p1 = pnand %p100_p0, %p97_p13 }
  0xbc   :  { %105 = shalt.err (!%p102_p1)
}
  0xbd   :  { %48 = dma.vmem_to_hbm [thread:$0]  %s43_s21, 256, %s155_s1, [#allocation4], %s111_s16, %s111_s16, %s112_s17  }
  0xbe   :  { %108 = dma.done.wait [#allocation4], 256  }
  0xbf   :  { %109 = vsyncadd [#allocation4], 4294967040 }
  0xc0   :  { %52 = vsyncpa [#allocation3], 1 }
  0xc1   :  { %53 = vsyncpa [#allocation4], 1 }

</bundles_post_ra>
